<compile_context>
chip_gen: v7x
topology: tpu7x:2x2x1
jax: 0.10.0
libtpu: 0.0.40
codegen_flags: <defaults>
</compile_context>

<pallas_src>
import math

import jax
import jax.numpy as jnp
from jax import lax
from jax.experimental import pallas as pl
from jax.experimental.pallas import tpu as pltpu


def _dp_matmul_bias_relu_kernel(x_ref, w_ref, b_ref, o_ref, acc_ref):
    """One (tm, tn) output tile of the wrapped model y = relu(x @ W + b).

    Grid = (M_tiles, N_tiles, K_tiles); K is the innermost (reduction) axis,
    accumulated into the resident f32 VMEM scratch `acc_ref`.
    """
    k = pl.program_id(2)

    @pl.when(k == 0)
    def _init():
        # Fold the bias into the accumulator init: (1, tn) f32 bias broadcasts
        # to the (tm, tn) tile once, so the finalize branch is relu+cast only.
        acc_ref[...] = jnp.broadcast_to(b_ref[...], acc_ref.shape)

    # bf16 x bf16 -> f32 accumulation on the MXU.
    acc_ref[...] += jnp.dot(
        x_ref[...], w_ref[...], preferred_element_type=jnp.float32
    )

    @pl.when(k == pl.num_programs(2) - 1)
    def _finalize():
        o_ref[...] = jnp.maximum(acc_ref[...], 0.0).astype(o_ref.dtype)


def _round_up(x, m):
    return ((x + m - 1) // m) * m


def custom_data_parallel_forward(x, w, b, *, tm=128, tn=128, tk=512,
                                 out_dtype=jnp.float32):
    """Emulates _CustomDataParallel.forward(x) for the synthetic inner model.

    DataParallel scatter/gather == batch (M) tiling of one pallas_call:
    each M tile is a "replica" shard; the output BlockSpec concatenates the
    shard results.  On v7x the parallel M/N axes are sharded across the two
    TensorCores; on v5e/v6e the grid is a cheap sequential loop over the tiles.
    """
    B, D_in = x.shape
    assert w.shape[0] == D_in
    D_out = w.shape[1]
    assert b.shape == (1, D_out)

    # Clamp tile sizes to the (padded) problem so small problems don't pad to
    # oversized tiles; keep sublane (8) / lane (128) alignment.
    tm = min(tm, _round_up(B, 8))
    tk = min(tk, _round_up(D_in, 128))
    tn = min(tn, _round_up(D_out, 128))

    # Zero-pad to tile multiples.  Padding contributes zero partial products and
    # is sliced off the output, so semantics are unchanged.
    Bp = _round_up(B, tm)
    Kp = _round_up(D_in, tk)
    Np = _round_up(D_out, tn)

    if (Bp, Kp) != (B, D_in):
        x = jnp.pad(x, ((0, Bp - B), (0, Kp - D_in)))
    if (Kp, Np) != (D_in, D_out):
        w = jnp.pad(w, ((0, Kp - D_in), (0, Np - D_out)))
    if Np != D_out:
        b = jnp.pad(b, ((0, 0), (0, Np - D_out)))
    b = b.astype(jnp.float32)

    grid = (Bp // tm, Np // tn, Kp // tk)

    x_bytes = x.size * x.dtype.itemsize
    w_bytes = w.size * w.dtype.itemsize
    o_bytes = Bp * Np * jnp.dtype(out_dtype).itemsize
    cost = pl.CostEstimate(
        flops=2 * Bp * Kp * Np,
        transcendentals=0,
        bytes_accessed=x_bytes * (Np // tn) + w_bytes * (Bp // tm) + o_bytes,
    )

    out = pl.pallas_call(
        _dp_matmul_bias_relu_kernel,
        out_shape=jax.ShapeDtypeStruct((Bp, Np), out_dtype),
        grid_spec=pltpu.PrefetchScalarGridSpec(
            num_scalar_prefetch=0,
            grid=grid,
            in_specs=[
                # per-"replica" batch tile of x: (tm, tk)
                pl.BlockSpec((tm, tk), lambda i, j, k: (i, k)),
                # weight K x N tile, streamed along K: (tk, tn)
                pl.BlockSpec((tk, tn), lambda i, j, k: (k, j)),
                # bias tile, resident across the K axis: (1, tn)
                pl.BlockSpec((1, tn), lambda i, j, k: (0, j)),
            ],
            out_specs=pl.BlockSpec((tm, tn), lambda i, j, k: (i, j)),
            scratch_shapes=[pltpu.VMEM((tm, tn), jnp.float32)],
        ),
        compiler_params=pltpu.CompilerParams(
            # M/N tiles are independent "replicas" (megacore-shardable on v7x);
            # K is the reduction axis feeding the resident accumulator.
            dimension_semantics=("parallel", "parallel", "arbitrary"),
            # Explicit VMEM budget, safe on v5e/v6e (128 MiB) and v7x (64 MiB).
            vmem_limit_bytes=32 * 1024 * 1024,
        ),
        cost_estimate=cost,
    )(x, w, b)

    if (Bp, Np) != (B, D_out):
        out = out[:B, :D_out]
    return out


if __name__ == "__main__":
    key = jax.random.PRNGKey(0)
    k_x, k_w, k_b = jax.random.split(key, 3)

    # Lane-/MXU-friendly small shapes: 256-row batch (2 parallel "replica"
    # tiles of 128), K = N = 256 (single K tile after clamping, 2 N tiles).
    B, D_in, D_out = 256, 256, 256

    # bf16 MXU operands (f32 accumulation inside the kernel).
    x = jax.random.normal(k_x, (B, D_in), dtype=jnp.float32).astype(jnp.bfloat16)
    w = (jax.random.normal(k_w, (D_in, D_out), dtype=jnp.float32)
         * (1.0 / math.sqrt(D_in))).astype(jnp.bfloat16)
    b = jax.random.normal(k_b, (1, D_out), dtype=jnp.float32) * 0.1

    out = custom_data_parallel_forward(x, w, b)
    out = jax.block_until_ready(out)

    # Reference: DataParallel over N replicas == single full-batch pass of the
    # wrapped model, computed at high precision from the same bf16 operands.
    ref = jnp.maximum(
        jnp.dot(x.astype(jnp.float32), w.astype(jnp.float32),
                precision=lax.Precision.HIGHEST) + b,
        0.0,
    )

    assert out.shape == (B, D_out)
    assert jnp.allclose(out, ref, atol=1e-2, rtol=1e-2), (
        float(jnp.max(jnp.abs(out - ref)))
    )

    print("KERNEL_OK")
</pallas_src>

<mosaic_0001>
module attributes {stable_mosaic.version = 11 : i64} {
  func.func @_dp_matmul_bias_relu_kernel(%arg0: i32, %arg1: i32, %arg2: i32, %arg3: memref<128x256xbf16, #tpu.memory_space<vmem>>, %arg4: memref<256x128xbf16, #tpu.memory_space<vmem>>, %arg5: memref<1x128xf32, #tpu.memory_space<vmem>>, %arg6: memref<128x128xf32, #tpu.memory_space<vmem>>, %arg7: memref<128x128xf32, #tpu.memory_space<vmem>>) attributes {dimension_semantics = [#tpu.dimension_semantics<parallel>, #tpu.dimension_semantics<parallel>, #tpu.dimension_semantics<arbitrary>], iteration_bounds = array<i64: 2, 2, 1>, scalar_prefetch = 0 : i64, scratch_operands = 1 : i64, tpu.core_type = #tpu.core_type<tc>, window_params = [{transform_indices = @transform_0, window_bounds = array<i64: 128, 256>}, {transform_indices = @transform_1, window_bounds = array<i64: 256, 128>}, {transform_indices = @transform_2, window_bounds = array<i64: 1, 128>}, {transform_indices = @transform_3, window_bounds = array<i64: 128, 128>}]} {
    %c0_i32 = arith.constant 0 : i32
    %0 = arith.cmpi eq, %arg2, %c0_i32 : i32
    %1 = arith.extui %0 : i1 to i32
    %c0_i32_0 = arith.constant 0 : i32
    %2 = arith.cmpi ne, %1, %c0_i32_0 : i32
    scf.if %2 {
      %c0_10 = arith.constant 0 : index
      %c0_11 = arith.constant 0 : index
      %12 = vector.load %arg5[%c0_10, %c0_11] : memref<1x128xf32, #tpu.memory_space<vmem>>, vector<1x128xf32>
      %13 = vector.shape_cast %12 : vector<1x128xf32> to vector<1x128xf32>
      %14 = vector.broadcast %13 : vector<1x128xf32> to vector<128x128xf32>
      %c0_12 = arith.constant 0 : index
      %c0_13 = arith.constant 0 : index
      %15 = vector.load %arg7[%c0_12, %c0_13] : memref<128x128xf32, #tpu.memory_space<vmem>>, vector<128x128xf32>
      tpu.vector_store %arg7[%c0_12, %c0_13], %14 {strides = array<i32>} : memref<128x128xf32, #tpu.memory_space<vmem>>, vector<128x128xf32>,
    } else {
    }
    %c0 = arith.constant 0 : index
    %c0_1 = arith.constant 0 : index
    %3 = vector.load %arg7[%c0, %c0_1] : memref<128x128xf32, #tpu.memory_space<vmem>>, vector<128x128xf32>
    %c0_2 = arith.constant 0 : index
    %c0_3 = arith.constant 0 : index
    %4 = vector.load %arg3[%c0_2, %c0_3] : memref<128x256xbf16, #tpu.memory_space<vmem>>, vector<128x256xbf16>
    %c0_4 = arith.constant 0 : index
    %c0_5 = arith.constant 0 : index
    %5 = vector.load %arg4[%c0_4, %c0_5] : memref<256x128xbf16, #tpu.memory_space<vmem>>, vector<256x128xbf16>
    %cst = arith.constant dense<0.000000e+00> : vector<128x128xf32>
    %6 = tpu.matmul %4, %5, %cst {dimension_numbers = #tpu.dot_dimension_numbers<[1], [0], [0], [1], [0, 0, 1, 1], [], []>} : vector<128x256xbf16>, vector<256x128xbf16>, vector<128x128xf32> -> vector<128x128xf32>
    %7 = arith.addf %3, %6 : vector<128x128xf32>
    %c0_6 = arith.constant 0 : index
    %c0_7 = arith.constant 0 : index
    %8 = vector.load %arg7[%c0_6, %c0_7] : memref<128x128xf32, #tpu.memory_space<vmem>>, vector<128x128xf32>
    tpu.vector_store %arg7[%c0_6, %c0_7], %7 {strides = array<i32>} : memref<128x128xf32, #tpu.memory_space<vmem>>, vector<128x128xf32>,
    %c0_i32_8 = arith.constant 0 : i32
    %9 = arith.cmpi eq, %arg2, %c0_i32_8 : i32
    %10 = arith.extui %9 : i1 to i32
    %c0_i32_9 = arith.constant 0 : i32
    %11 = arith.cmpi ne, %10, %c0_i32_9 : i32
    scf.if %11 {
      %c0_10 = arith.constant 0 : index
      %c0_11 = arith.constant 0 : index
      %12 = vector.load %arg7[%c0_10, %c0_11] : memref<128x128xf32, #tpu.memory_space<vmem>>, vector<128x128xf32>
      %cst_12 = arith.constant 0.000000e+00 : f32
      %13 = vector.broadcast %cst_12 : f32 to vector<128x128xf32>
      %14 = arith.maximumf %12, %13 : vector<128x128xf32>
      %c0_13 = arith.constant 0 : index
      %c0_14 = arith.constant 0 : index
      %15 = vector.load %arg6[%c0_13, %c0_14] : memref<128x128xf32, #tpu.memory_space<vmem>>, vector<128x128xf32>
      tpu.vector_store %arg6[%c0_13, %c0_14], %14 {strides = array<i32>} : memref<128x128xf32, #tpu.memory_space<vmem>>, vector<128x128xf32>,
    } else {
    }
    return
  }
  func.func @transform_0(%arg0: i32, %arg1: i32, %arg2: i32) -> (i32, i32) {
    %c0_i32 = arith.constant 0 : i32
    return %arg0, %arg2 : i32, i32
  }
  func.func @transform_1(%arg0: i32, %arg1: i32, %arg2: i32) -> (i32, i32) {
    %c0_i32 = arith.constant 0 : i32
    return %arg2, %arg1 : i32, i32
  }
  func.func @transform_2(%arg0: i32, %arg1: i32, %arg2: i32) -> (i32, i32) {
    %c0_i32 = arith.constant 0 : i32
    %c0_i32_0 = arith.constant 0 : i32
    return %c0_i32, %arg1 : i32, i32
  }
  func.func @transform_3(%arg0: i32, %arg1: i32, %arg2: i32) -> (i32, i32) {
    %c0_i32 = arith.constant 0 : i32
    return %arg0, %arg1 : i32, i32
  }
}

</mosaic_0001>

<bundles_post_ra>
// kernel: tpu_custom_call.1
= control target key start
LH: loop header
LB: loop body
LE: loop exit
PB: predicated region body
PF: predicated region fallthrough
CT: control target
= control target key end

     0   :  { %s1848_s0 = inlined_call_operand.hbm [shape: bf16[256,256], index: 0, kind: input, shape index: {}]   ;;  %s1849_s1 = inlined_call_operand.hbm [shape: bf16[256,256], index: 1, kind: input, shape index: {}]   ;;  %s1850_s2 = inlined_call_operand.vmem [shape: f32[1,256], index: 2, kind: input, shape index: {}]   ;;  %s1851_s3 = inlined_call_operand.hbm [shape: f32[256,256], index: 3, kind: output, shape index: {}]  }
   0x1   :  { %1864 = sst [smem:[#allocation18_spill]] %s1848_s0 }
   0x2   :  { %1865 = sst [smem:[#allocation19_spill]] %s1850_s2 }
   0x3   :  { %1866 = sst [smem:[#allocation20_spill]] %s1851_s3 }
   0x4   :  { %8 = vsyncpa [#allocation4], 0 }
   0x5   :  { %10 = vsyncpa [#allocation4 + $0x1], 0 }
   0x6   :  { %11 = vsyncpa [#allocation7], 0 }
   0x7   :  { %13 = vsyncpa [#allocation7 + $0x1], 0 }
   0x8   :  { %14 = vsyncpa [#allocation5], 0 }
   0x9   :  { %16 = vsyncpa [#allocation5 + $0x1], 0  ;;  %s1423_s12 = smov 0   ;;  %s1425_s13 = smov 0  }
   0xa   :  { %s1427_s14 = smov 0   ;;  %s1429_s15 = smov 0  }
   0xb   :  { %s1431_s16 = smov 0   ;;  %s1433_s17 = smov 0  }
   0xc   :  { %s1435_s18 = smov 0   ;;  %s1437_s19 = smov 0  }
   0xd   :  { %s1439_s20 = smov 0   ;;  %s1441_s21 = smov 0  }
   0xe   :  { %s1443_s22 = smov 0   ;;  %s1445_s23 = smov 0  }
   0xf   :  { %s1447_s24 = smov 0   ;;  %s1449_s25 = smov 0  }
  0x10 LB: > { %1867 = sst [smem:[#allocation12_spill]] %s1379_s22  ;;  %s867_s26 = sadd.s32 4294967295, %s1391_s25   ;;  %s1391_s25 = sphi %s1449_s25, %s22_s25   ;;  %s1387_s24 = sphi %s1447_s24, %s1915_s24   ;;  %s1383_s23 = sphi %s1445_s23, %s1914_s23   ;;  %s1379_s22 = sphi %s1443_s22, %s1900_s22   ;;  %s1375_s21 = sphi %s1441_s21, %s1913_s21   ;;  %s1371_s20 = sphi %s1439_s20, %s1912_s20   ;;  %s1367_s19 = sphi %s1437_s19, %s1911_s19   ;;  %s1363_s18 = sphi %s1435_s18, %s1910_s18   ;;  %s1359_s17 = sphi %s1433_s17, %s1909_s17   ;;  %s1355_s16 = sphi %s1431_s16, %s1908_s16   ;;  %s1351_s15 = sphi %s1429_s15, %s1907_s15   ;;  %s1347_s14 = sphi %s1427_s14, %s1906_s14   ;;  %s1343_s13 = sphi %s1425_s13, %s1905_s13   ;;  %s1339_s12 = sphi %s1423_s12, %s1904_s12  }
  0x11   : > { %1868 = sst [smem:[#allocation13_spill]] %s1387_s24  ;;  %p57_p0 = scmp.ne.s32.totalorder %s1371_s20, %s1367_s19 }
  0x12   : > { %p1853_p1 = scmp.eq.s32.totalorder %s1391_s25, 0  ;;  %p63_p2 = scmp.ne.s32.totalorder %s1367_s19, %s1363_s18 }
  0x13   : > { %p1498_p3 = scmp.eq.s32.totalorder %s867_s26, 0  ;;  %p1502_p4 = scmp.eq.s32.totalorder %s867_s26, 3 }
  0x14   : > { %p59_p5 = por %p1853_p1, %p57_p0  ;;  %p1852_p7 = scmp.lt.s32.totalorder %s1391_s25, 4 }
  0x15   : > { %s1870_s30 = scalar_select %p1502_p4, 1, 0 }
  0x16   : > { %p1510_p6 = por %p1498_p3, %p63_p2  ;;  %s169_s5 = sand.u32 1, %s1371_s20  }
  0x17   : > { %s921_s6 = sshll.u32 %s1387_s24, 11  ;;  %s871_s7 = sshll.u32 %s169_s5, 7 }
  0x18   : > { %s1871_s4 = scalar_select %p1510_p6, 1, 0 }
  0x19   : > { %s1872_s0 = sld [smem:[#allocation18_spill]]  ;;  %s173_s11 = scalar_lea.vmem [#allocation3], %s871_s7 }
  0x1a   : > { %s183_s18 = sshll.u32 %s173_s11, 4  ;;  %p1524_p8 = pnand %p1852_p7, %p59_p5  ;;  %s1528_s18 = int_to_ptr.vmem [resolvable:$true] %s183_s18 }
  0x1b   : > { %s1530_s28 = scalar_lea.sflag [#allocation4], %s169_s5 }
  0x1c   : > { %p1183_p10 = pneg %p1524_p8 }
  0x1f   : > { %s1520_s10 = scalar_lea.hbm %s1872_s0, %s921_s6  ;;  %s1186_s9 = scalar_lea.hbm %s1872_s0, 4096 }
  0x20   : > { %s1181_s8 = scalar_lea.hbm %s1520_s10, 2048  ;;  %p1187_p13 = scmp.lt.u32.totalorder %s1520_s10, %s1872_s0 }
  0x21   : > { %p1182_p9 = scmp.ne.s32.totalorder %s1520_s10, %s1181_s8  ;;  %p1188_p0 = scmp.lt.u32.totalorder %s1186_s9, %s1181_s8 }
  0x22   : > { %p1190_p5 = scmp.lt.u32.totalorder %s1181_s8, %s1520_s10 }
  0x23   : > { %p1184_p11 = pnand %p1183_p10, %p1182_p9  ;;  %p1189_p2 = por %p1188_p0, %p1187_p13 }
  0x25   : > { %p1185_p12 = pneg %p1184_p11  ;;  %p1191_p7 = por %p1190_p5, %p1189_p2 }
  0x27   : > { %p1192_p1 = pnand %p1191_p7, %p1185_p12 }
  0x29   : > { %1195 = shalt.err (!%p1192_p1)
}
  0x2a   : > { %s1196_s5 = scalar_lea.vmem %s1528_s18, 2048  ;;  %s1393_s6 = smov [#allocation3]  }
  0x2b   : > { %p1197_p9 = scmp.ne.s32.totalorder %s1528_s18, %s1196_s5  ;;  %s1201_s7 = sshll.u32 %s1393_s6, 4  ;;  %s1202_s7 = int_to_ptr.vmem [resolvable:$false] %s1201_s7 }
  0x2c   : > { %s1203_s27 = scalar_lea.vmem %s1202_s7, 4096  ;;  %p1204_p4 = scmp.lt.s32.totalorder %s1528_s18, %s1202_s7 }
  0x2d   : > { %p1199_p11 = pnand %p1197_p9, %p1183_p10  ;;  %p1205_p13 = scmp.lt.s32.totalorder %s1203_s27, %s1196_s5 }
  0x2f   : > { %p1200_p6 = pneg %p1199_p11  ;;  %p1206_p0 = por %p1205_p13, %p1204_p4 }
  0x31   : > { %p1207_p2 = pnand %p1206_p0, %p1200_p6 }
  0x33   : > { %1210 = shalt.err (!%p1207_p2)
}
  0x34   : > { %s1855_s8 = smov 128   ;;  %s1395_s9 = smov 8  }
  0x35   : > { %1012 = dma.hbm_to_vmem [thread:$0]  (!%p1524_p8), %s1520_s10, 2048, %s1528_s18, %s1530_s28, %s1855_s8, %s1855_s8, %s1395_s9  }
  0x36   : > { %p877_p1 = scmp.ge.s32.totalorder %s1391_s25, 1  ;;  %p220_p4 = scmp.lt.s32.totalorder %s1391_s25, 5 }
  0x37   : > { %s868_s5 = sadd.s32 4294967294, %s1391_s25   ;;  %s37_s6 = sadd.s32 1, %s1383_s23 }
  0x38   : > { %p1562_p6 = pnand %p877_p1, %p220_p4  ;;  %s78_s7 = sadd.s32 1, %s1359_s17 }
  0x39   : > { %p39_p7 = scmp.ge.s32.totalorder %s37_s6, 2  ;;  %p85_p10 = scmp.ne.s32.totalorder %s1359_s17, %s1355_s16 }
  0x3a   : > { %p91_p12 = scmp.ne.s32.totalorder %s1355_s16, %s1351_s15  ;;  %s132_s26 = sadd.s32 1, %s1347_s14 }
  0x3b   : > { %s1917_s6 = smov (%p39_p7, %s37_s6), 0  ;;  %s1876_s28 = sadd.s32 1, %s1387_s24 }
  0x3c   : > { %1875 = sst [smem:[#allocation14_spill]] %s1917_s6  ;;  %s1919_s28 = smov (!%p39_p7, %s1876_s28), %s1387_s24 }
  0x3d   : > { %s74_s10 = ssub.s32 %s1383_s23, %s1917_s6  ;;  %p1877_p8 = scmp.eq.s32.totalorder %s1391_s25, 0 }
  0x3e   : > { %p43_p9 = scmp.ge.s32.totalorder %s1919_s28, 2  ;;  %p76_p11 = scmp.eq.s32.totalorder %s74_s10, 0 }
  0x3f   : > { %p1583_p5 = por %p85_p10, %p1877_p8  ;;  %p1589_p13 = por %p91_p12, %p1498_p3 }
  0x40   : > { %p142_p0 = scmp.ne.s32.totalorder %s1347_s14, %s1343_s13  ;;  %s1921_s28 = smov (%p43_p9, %s1919_s28), 0 }
  0x41   : > { %s1879_s15 = scalar_select %p1589_p13, 1, 0 }
  0x42   : > { %1880 = sst [smem:[#allocation15_spill]] %s1921_s28  ;;  %s45_s9 = ssub.s32 %s1387_s24, %s1921_s28 }
  0x43   : > { %s1598_s27 = scalar_select %p76_p11, %s1359_s17, %s78_s7  }
  0x44   : > { %p1882_p2 = scmp.ne.s32.totalorder %s1870_s30, 0  ;;  %p48_p4 = scmp.eq.s32.totalorder %s45_s9, 0 }
  0x45   : > { %1881 = sst [smem:[#allocation16_spill]] %s1598_s27  ;;  %s129_s29 = sor.u32 %s74_s10, %s45_s9 }
  0x46   : > { %p1604_p1 = por %p1882_p2, %p142_p0  ;;  %p130_p3 = scmp.eq.s32.totalorder %s129_s29, 0 }
  0x47   : > { %p148_p7 = scmp.ne.s32.totalorder %s1343_s13, %s1339_s12  ;;  %s1885_s0 = sadd.s32 1, %s1371_s20 }
  0x48   : > { %s1883_s8 = scalar_select %p1604_p1, 1, 0 }
  0x49   : > { %s1613_s6 = scalar_select %p48_p4, %s1371_s20, %s1885_s0  }
  0x4a   : > { %1884 = sst [smem:[#allocation17_spill]] %s1883_s8  ;;  %p149_p10 = scmp.eq.s32.totalorder %s868_s5, 3 }
  0x4b   : > { %s1616_s3 = scalar_select %p130_p3, %s1347_s14, %s132_s26  }
  0x4c   : > { %s193_s7 = sand.u32 1, %s1359_s17   ;;  %p1619_p12 = por %p149_p10, %p148_p7 }
  0x4d   : > { %s875_s27 = sshll.u32 %s193_s7, 7  ;;  %s876_s28 = sshll.u32 %s1383_s23, 6 }
  0x4e   : > { %s1886_s30 = scalar_select %p1619_p12, 1, 0 }
  0x4f   : > { %s197_s24 = scalar_lea.vmem [#allocation6], %s875_s27  ;;  %s1627_s10 = scalar_lea.hbm %s1849_s1, %s876_s28 }
  0x50   : > { %s206_s8 = sshll.u32 %s197_s24, 4  ;;  %p1887_p8 = scmp.lt.s32.totalorder %s1391_s25, 4  ;;  %s1629_s8 = int_to_ptr.vmem [resolvable:$true] %s206_s8 }
  0x51   : > { %s1639_s24 = scalar_lea.sflag [#allocation7], %s193_s7  ;;  %s1211_s5 = scalar_lea.hbm %s1627_s10, 2048 }
  0x52   : > { %p1635_p9 = pnand %p1887_p8, %p1583_p5  ;;  %p1212_p11 = scmp.ne.s32.totalorder %s1627_s10, %s1211_s5 }
  0x53   : > { %s1216_s26 = scalar_lea.hbm %s1849_s1, 4096  ;;  %p1217_p5 = scmp.lt.u32.totalorder %s1627_s10, %s1849_s1 }
  0x54   : > { %p1213_p0 = pneg %p1635_p9  ;;  %p1218_p3 = scmp.lt.u32.totalorder %s1216_s26, %s1211_s5 }
  0x55   : > { %p1220_p10 = scmp.lt.u32.totalorder %s1211_s5, %s1627_s10 }
  0x56   : > { %p1214_p2 = pnand %p1213_p0, %p1212_p11  ;;  %p1219_p7 = por %p1218_p3, %p1217_p5 }
  0x58   : > { %p1215_p4 = pneg %p1214_p2  ;;  %p1221_p8 = por %p1220_p10, %p1219_p7 }
  0x5a   : > { %p1222_p12 = pnand %p1221_p8, %p1215_p4 }
  0x5c   : > { %1225 = shalt.err (!%p1222_p12)
}
  0x5d   : > { %s1226_s27 = scalar_lea.vmem %s1629_s8, 2048  ;;  %s1396_s9 = smov [#allocation6]  }
  0x5e   : > { %p1227_p11 = scmp.ne.s32.totalorder %s1629_s8, %s1226_s27  ;;  %s1231_s29 = sshll.u32 %s1396_s9, 4  ;;  %s1232_s29 = int_to_ptr.vmem [resolvable:$false] %s1231_s29 }
  0x5f   : > { %s1233_s7 = scalar_lea.vmem %s1232_s29, 4096  ;;  %p1234_p13 = scmp.lt.s32.totalorder %s1629_s8, %s1232_s29 }
  0x60   : > { %p1229_p2 = pnand %p1227_p11, %p1213_p0  ;;  %p1235_p5 = scmp.lt.s32.totalorder %s1233_s7, %s1226_s27 }
  0x62   : > { %p1230_p1 = pneg %p1229_p2  ;;  %p1236_p3 = por %p1235_p5, %p1234_p13 }
  0x64   : > { %p1237_p7 = pnand %p1236_p3, %p1230_p1 }
  0x66   : > { %1240 = shalt.err (!%p1237_p7)
}
  0x67   : > { %s1397_s5 = smov 64   ;;  %s1398_s2 = smov 4  }
  0x68   : > { %s1889_s22 = smov 128   ;;  %224 = sbr.rel (%p1562_p6) target bundleno = 410 (0x19a), region = 32 }
  0x69   : > { %1015 = dma.hbm_to_vmem [thread:$0]  (!%p1635_p9), %s1627_s10, 2048, %s1629_s8, %s1639_s24, %s1889_s22, %s1397_s5, %s1398_s2  }
  0x6a   : > { %s226_s26 = sand.u32 (!%p1562_p6), 1, %s1367_s19   ;;  %p1890_p13 = scmp.ne.s32.totalorder (!%p1562_p6), %s1871_s4, 0 }
  0x6b   : > { %s878_s28 = sshll.u32 (!%p1562_p6), %s226_s26, 7  ;;  %s227_s18 = scalar_lea.sflag (!%p1562_p6), [#allocation4], %s226_s26 }
  0x6c   : > { %s1671_s27 = scalar_lea.vmem (!%p1562_p6), [#allocation3], %s878_s28 }
  0x6f   : > { %1326 = dma.done.wait (%p1890_p13), %s227_s18, 2048  }
  0x70   : > { %1328 = vsyncadd (%p1890_p13), %s227_s18, 4294965248  ;;  %s235_s0 = sand.u32 1, %s1355_s16   ;;  %p1891_p6 = scmp.ne.s32.totalorder %s1879_s15, 0 }
  0x71   : > { %s879_s9 = sshll.u32 %s235_s0, 7  ;;  %s236_s8 = scalar_lea.sflag [#allocation7], %s235_s0 }
  0x72   : > { %s1678_s10 = scalar_lea.vmem [#allocation6], %s879_s9 }
  0x73   : > { %1330 = dma.done.wait (%p1891_p6), %s236_s8, 2048  }
  0x74   : > { %1332 = vsyncadd (%p1891_p6), %s236_s8, 4294965248  ;;  %v1141_v0 = vld [vmem:[%s1678_s10 + $0x40] sm:$0xff]   ;;  %v1143_v2 = vld [vmem:[%s1678_s10 + $0x48] sm:$0xff]   ;;  %p273_p1 = scmp.lt.s32.totalorder %s1375_s21, 1  ;;  %s1892_s24 = sld [smem:[#allocation19_spill]] }
  0x75   : > { %v1142_v1 = vld [vmem:[%s1678_s10] sm:$0xff]   ;;  %923 = vmatprep.subr.bf16.mxu0 %v1141_v0  ;;  %987 = vmatprep.subr.bf16.mxu1 %v1141_v0  ;;  %v1144_v3 = vld [vmem:[%s1678_s10 + $0x8] sm:$0xff]   ;;  %v1145_v4 = vld [vmem:[%s1678_s10 + $0x50] sm:$0xff]   ;;  %s267_s7 = sand.u32 1, %s1343_s13   ;;  %s1893_s22 = sld [smem:[#allocation12_spill]] }
  0x76   : > { %924 = vmatpush3.bf16.msra.mxu0 %v1142_v1  ;;  %995 = vmatpush3.bf16.msra.mxu1 %v1142_v1  ;;  %v1146_v5 = vld [vmem:[%s1678_s10 + $0x10] sm:$0xff]   ;;  %v1147_v6 = vld [vmem:[%s1678_s10 + $0x58] sm:$0xff]   ;;  %v1149_v8 = vld [vmem:[%s1678_s10 + $0x60] sm:$0xff]   ;;  %s274_s4 = scalar_select %p273_p1, %s1375_s21, 1 }
  0x77   : > { %925 = vmatprep.subr.bf16.mxu0 %v1143_v2  ;;  %988 = vmatprep.subr.bf16.mxu1 %v1143_v2  ;;  %v1148_v7 = vld [vmem:[%s1678_s10 + $0x18] sm:$0xff]   ;;  %v1150_v9 = vld [vmem:[%s1678_s10 + $0x20] sm:$0xff]   ;;  %v1151_v10 = vld [vmem:[%s1678_s10 + $0x68] sm:$0xff]   ;;  %s880_s5 = sshll.u32 %s267_s7, 7  ;;  %s1895_s8 = sld [smem:[#allocation20_spill]] }
  0x78   : > { %v1159_v11 = vld [vmem:[%s1671_s27 + $0x4] ss:$8 sps:$4 sm:$0xff]   ;;  %v1153_v14 = vld [vmem:[%s1678_s10 + $0x70] sm:$0xff]   ;;  %v1155_v16 = vld [vmem:[%s1678_s10 + $0x78] sm:$0xff]   ;;  %s1730_s2 = scalar_lea.vmem [#allocation8], %s880_s5  ;;  %s1399_s15 = smov [#allocation8]  }
  0x79   : > { %v1162_v12 = vld [vmem:[%s1671_s27 + $0x44] ss:$8 sps:$4 sm:$0xff]   ;;  %577 = vmatprep.mubr.bf16.mxu0 %v1159_v11  ;;  %v1154_v15 = vld [vmem:[%s1678_s10 + $0x30] sm:$0xff]   ;;  %v1156_v17 = vld [vmem:[%s1678_s10 + $0x38] sm:$0xff]  }
  0x7a   : > { %926 = vmatpush3.bf16.msra.mxu0 %v1144_v3  ;;  %996 = vmatpush3.bf16.msra.mxu1 %v1144_v3  ;;  %v1152_v13 = vld [vmem:[%s1678_s10 + $0x28] sm:$0xff]   ;;  %v1163_v20 = vld [vmem:[%s1671_s27 + $0x14] ss:$8 sps:$4 sm:$0xff]   ;;  %v1167_v22 = vld [vmem:[%s1671_s27 + $0x10] ss:$8 sps:$4 sm:$0xff]   ;;  %s275_s29 = scalar_lea.vmem %s1892_s24, %s274_s4  ;;  %s1772_s4 = scalar_lea.sflag [#allocation5], %s267_s7 }
  0x7b   : > { %927 = vmatprep.subr.bf16.mxu0 %v1145_v4  ;;  %989 = vmatprep.subr.bf16.mxu1 %v1145_v4  ;;  %v1157_v18 = vld [vmem:[%s1671_s27] ss:$8 sps:$4 sm:$0xff]   ;;  %v1165_v21 = vld [vmem:[%s1671_s27 + $0x54] ss:$8 sps:$4 sm:$0xff]   ;;  %v1168_v23 = vld [vmem:[%s1671_s27 + $0x50] ss:$8 sps:$4 sm:$0xff]  }
  0x7c   : > { %609 = vmatprep.mubr.bf16.mxu1 %v1162_v12  ;;  %v1160_v19 = vld [vmem:[%s1671_s27 + $0x40] ss:$8 sps:$4 sm:$0xff]   ;;  %v1169_v24 = vld [vmem:[%s1671_s27 + $0x24] ss:$8 sps:$4 sm:$0xff]   ;;  %v1175_v28 = vld [vmem:[%s1671_s27 + $0x34] ss:$8 sps:$4 sm:$0xff]  }
  0x7d   : > { %v1171_v25 = vld [vmem:[%s1671_s27 + $0x64] ss:$8 sps:$4 sm:$0xff]   ;;  %v1173_v26 = vld [vmem:[%s1671_s27 + $0x20] ss:$8 sps:$4 sm:$0xff]   ;;  %v1177_v29 = vld [vmem:[%s1671_s27 + $0x74] ss:$8 sps:$4 sm:$0xff]  }
  0x7e   : > { %928 = vmatpush3.bf16.msra.mxu0 %v1146_v5  ;;  %997 = vmatpush3.bf16.msra.mxu1 %v1146_v5  ;;  %v1174_v27 = vld [vmem:[%s1671_s27 + $0x60] ss:$8 sps:$4 sm:$0xff]   ;;  %v1179_v30 = vld [vmem:[%s1671_s27 + $0x30] ss:$8 sps:$4 sm:$0xff]   ;;  %s922_s26 = sshll.u32 %s1893_s22, 5  ;;  %s1245_s24 = sshll.u32 %s1399_s15, 4  ;;  %s1246_s24 = int_to_ptr.vmem [resolvable:$false] %s1245_s24 }
  0x7f   : > { %929 = vmatprep.subr.bf16.mxu0 %v1147_v6  ;;  %990 = vmatprep.subr.bf16.mxu1 %v1147_v6  ;;  %v1180_v31 = vld [vmem:[%s1671_s27 + $0x70] ss:$8 sps:$4 sm:$0xff]   ;;  %v1722_v34 = vld [vmem:[%s275_s29] ss:$0 sm:$0xff]  ;;  %s738_s28 = sadd.s32 %s1375_s21, %s922_s26  ;;  %s741_s21 = sshll.u32 %s1730_s2, 4  ;;  %s1764_s21 = int_to_ptr.vmem [resolvable:$true] %s741_s21 }
  0x80   : > { %s917_s18 = sshll.u32 %s738_s28, 7  ;;  %s1894_s27 = sld [smem:[#allocation17_spill]] }
  0x81   : > { %s1762_s10 = scalar_lea.hbm %s1895_s8, %s917_s18  ;;  %s1241_s11 = scalar_lea.vmem %s1764_s21, 2048 }
  0x82   : > { %930 = vmatpush3.bf16.msra.mxu0 %v1148_v7  ;;  %998 = vmatpush3.bf16.msra.mxu1 %v1148_v7  ;;  %p1242_p12 = scmp.ne.s32.totalorder %s1764_s21, %s1241_s11  ;;  %s1247_s29 = scalar_lea.vmem %s1246_s24, 4096 }
  0x83   : > { %931 = vmatprep.subr.bf16.mxu0 %v1149_v8  ;;  %991 = vmatprep.subr.bf16.mxu1 %v1149_v8  ;;  %p1248_p10 = scmp.lt.s32.totalorder %s1764_s21, %s1246_s24  ;;  %p1249_p8 = scmp.lt.s32.totalorder %s1247_s29, %s1241_s11 }
  0x85   : > { %p1250_p11 = por %p1249_p8, %p1248_p10 }
  0x86   : > { %932 = vmatpush3.bf16.msra.mxu0 %v1150_v9  ;;  %999 = vmatpush3.bf16.msra.mxu1 %v1150_v9  ;;  %p1896_p9 = scmp.ne.s32.totalorder %s1894_s27, 0 }
  0x87   : > { %933 = vmatprep.subr.bf16.mxu0 %v1151_v10  ;;  %992 = vmatprep.subr.bf16.mxu1 %v1151_v10 }
  0x88   : > { %p1243_p0 = pnand %p1242_p12, %p1896_p9 }
  0x8a   : > { %934 = vmatpush3.bf16.msra.mxu0 %v1152_v13  ;;  %1000 = vmatpush3.bf16.msra.mxu1 %v1152_v13  ;;  %p1244_p4 = pneg %p1243_p0 }
  0x8b   : > { %935 = vmatprep.subr.bf16.mxu0 %v1153_v14  ;;  %993 = vmatprep.subr.bf16.mxu1 %v1153_v14 }
  0x8c   : > { %p1251_p2 = pnand %p1250_p11, %p1244_p4 }
  0x8e   : > { %936 = vmatpush3.bf16.msra.mxu0 %v1154_v15  ;;  %1001 = vmatpush3.bf16.msra.mxu1 %v1154_v15 }
  0x8f   : > { %937 = vmatprep.subr.bf16.mxu0 %v1155_v16  ;;  %994 = vmatprep.subr.bf16.mxu1 %v1155_v16 }
  0x92   : > { %938 = vmatpush3.bf16.msra.mxu0 %v1156_v17  ;;  %1002 = vmatpush3.bf16.msra.mxu1 %v1156_v17 }
  0x95   : > { %578 = vmatmul.mubr.bf16.vlgmr.msra.gmra.mrb[0].mxu0 %v1157_v18  ;;  %610 = vmatmul.mubr.bf16.vlgmr.msra.gmra.mrb[0].mxu1 %v1160_v19 }
  0x96   : > { %585 = vmatprep.mubr.bf16.mxu0 %v1163_v20  ;;  %617 = vmatprep.mubr.bf16.mxu1 %v1165_v21 }
  0x9d   : > { %586 = vmatmul.mubr.bf16.gmra.mrb[4].mxu0 %v1167_v22  ;;  %618 = vmatmul.mubr.bf16.gmra.mrb[4].mxu1 %v1168_v23 }
  0x9e   : > { %593 = vmatprep.mubr.bf16.mxu0 %v1169_v24  ;;  %625 = vmatprep.mubr.bf16.mxu1 %v1171_v25 }
  0xa5   : > { %594 = vmatmul.mubr.bf16.gmra.mrb[8].mxu0 %v1173_v26  ;;  %626 = vmatmul.mubr.bf16.gmra.mrb[8].mxu1 %v1174_v27 }
  0xa6   : > { %601 = vmatprep.mubr.bf16.mxu0 %v1175_v28  ;;  %633 = vmatprep.mubr.bf16.mxu1 %v1177_v29 }
  0xad   : > { %602 = vmatmul.mubr.bf16.gmra.mrb[12].mxu0 %v1179_v30  ;;  %634 = vmatmul.mubr.bf16.gmra.mrb[12].mxu1 %v1180_v31 }
 0x168   : > { %v939_v32 = vpop.f32.mrb[0].mxu0  ;;  %v963_v33 = vpop.f32.mrb[0].mxu1 }
 0x169   : > { %v940_v35 = vpop.f32.mrb[1].mxu0  ;;  %v964_v36 = vpop.f32.mrb[1].mxu1 }
 0x16a   : > { %v941_v37 = vadd.f32 %v940_v35, %v939_v32  ;;  %v965_v38 = vadd.f32 %v964_v36, %v963_v33  ;;  %v942_v39 = vpop.f32.mrb[2].mxu0  ;;  %v966_v40 = vpop.f32.mrb[2].mxu1 }
 0x16b   : > { %v943_v41 = vpop.f32.mrb[3].mxu0  ;;  %v967_v42 = vpop.f32.mrb[3].mxu1 }
 0x16c   : > { %v642_v43 = vadd.f32 %v941_v37, %v1722_v34  ;;  %v650_v44 = vadd.f32 %v965_v38, %v1722_v34  ;;  %v944_v45 = vadd.f32 %v943_v41, %v942_v39  ;;  %v968_v46 = vadd.f32 %v967_v42, %v966_v40 }
 0x16e   : > { %v693_v47 = vmax.f32 %v642_v43, 0.0  ;;  %v701_v48 = vmax.f32 %v650_v44, 0.0  ;;  %v643_v49 = vadd.f32 %v944_v45, %v1722_v34  ;;  %v651_v50 = vadd.f32 %v968_v46, %v1722_v34 }
 0x170   : > { %709 = vst [vmem:[%s1730_s2] sm:$0xff] %v693_v47  ;;  %717 = vst [vmem:[%s1730_s2 + $0x40] sm:$0xff] %v701_v48  ;;  %v694_v51 = vmax.f32 %v643_v49, 0.0  ;;  %v702_v52 = vmax.f32 %v651_v50, 0.0  ;;  %v945_v53 = vpop.f32.mrb[4].mxu0  ;;  %v969_v54 = vpop.f32.mrb[4].mxu1 }
 0x171   : > { %v946_v55 = vpop.f32.mrb[5].mxu0  ;;  %v970_v56 = vpop.f32.mrb[5].mxu1 }
 0x172   : > { %710 = vst [vmem:[%s1730_s2 + $0x8] sm:$0xff] %v694_v51  ;;  %718 = vst [vmem:[%s1730_s2 + $0x48] sm:$0xff] %v702_v52  ;;  %v947_v57 = vadd.f32 %v946_v55, %v945_v53  ;;  %v971_v58 = vadd.f32 %v970_v56, %v969_v54  ;;  %v948_v59 = vpop.f32.mrb[6].mxu0  ;;  %v972_v60 = vpop.f32.mrb[6].mxu1 }
 0x173   : > { %v949_v61 = vpop.f32.mrb[7].mxu0  ;;  %v973_v62 = vpop.f32.mrb[7].mxu1 }
 0x174   : > { %v644_v63 = vadd.f32 %v947_v57, %v1722_v34  ;;  %v652_v0 = vadd.f32 %v971_v58, %v1722_v34  ;;  %v950_v1 = vadd.f32 %v949_v61, %v948_v59  ;;  %v974_v2 = vadd.f32 %v973_v62, %v972_v60 }
 0x176   : > { %v695_v3 = vmax.f32 %v644_v63, 0.0  ;;  %v703_v4 = vmax.f32 %v652_v0, 0.0  ;;  %v645_v5 = vadd.f32 %v950_v1, %v1722_v34  ;;  %v653_v6 = vadd.f32 %v974_v2, %v1722_v34 }
 0x178   : > { %711 = vst [vmem:[%s1730_s2 + $0x10] sm:$0xff] %v695_v3  ;;  %719 = vst [vmem:[%s1730_s2 + $0x50] sm:$0xff] %v703_v4  ;;  %v696_v7 = vmax.f32 %v645_v5, 0.0  ;;  %v704_v8 = vmax.f32 %v653_v6, 0.0  ;;  %v951_v9 = vpop.f32.mrb[8].mxu0  ;;  %v975_v10 = vpop.f32.mrb[8].mxu1 }
 0x179   : > { %v952_v11 = vpop.f32.mrb[9].mxu0  ;;  %v976_v12 = vpop.f32.mrb[9].mxu1 }
 0x17a   : > { %712 = vst [vmem:[%s1730_s2 + $0x18] sm:$0xff] %v696_v7  ;;  %720 = vst [vmem:[%s1730_s2 + $0x58] sm:$0xff] %v704_v8  ;;  %v953_v13 = vadd.f32 %v952_v11, %v951_v9  ;;  %v977_v14 = vadd.f32 %v976_v12, %v975_v10  ;;  %v954_v15 = vpop.f32.mrb[10].mxu0  ;;  %v978_v16 = vpop.f32.mrb[10].mxu1 }
 0x17b   : > { %v955_v17 = vpop.f32.mrb[11].mxu0  ;;  %v979_v18 = vpop.f32.mrb[11].mxu1 }
 0x17c   : > { %v646_v19 = vadd.f32 %v953_v13, %v1722_v34  ;;  %v654_v20 = vadd.f32 %v977_v14, %v1722_v34  ;;  %v956_v21 = vadd.f32 %v955_v17, %v954_v15  ;;  %v980_v22 = vadd.f32 %v979_v18, %v978_v16 }
 0x17e   : > { %v697_v23 = vmax.f32 %v646_v19, 0.0  ;;  %v705_v24 = vmax.f32 %v654_v20, 0.0  ;;  %v647_v25 = vadd.f32 %v956_v21, %v1722_v34  ;;  %v655_v26 = vadd.f32 %v980_v22, %v1722_v34 }
 0x180   : > { %713 = vst [vmem:[%s1730_s2 + $0x20] sm:$0xff] %v697_v23  ;;  %721 = vst [vmem:[%s1730_s2 + $0x60] sm:$0xff] %v705_v24  ;;  %v698_v27 = vmax.f32 %v647_v25, 0.0  ;;  %v706_v28 = vmax.f32 %v655_v26, 0.0  ;;  %v957_v29 = vpop.f32.mrb[12].mxu0  ;;  %v981_v30 = vpop.f32.mrb[12].mxu1 }
 0x181   : > { %v958_v31 = vpop.f32.mrb[13].mxu0  ;;  %v982_v32 = vpop.f32.mrb[13].mxu1 }
 0x182   : > { %714 = vst [vmem:[%s1730_s2 + $0x28] sm:$0xff] %v698_v27  ;;  %722 = vst [vmem:[%s1730_s2 + $0x68] sm:$0xff] %v706_v28  ;;  %v959_v33 = vadd.f32 %v958_v31, %v957_v29  ;;  %v983_v35 = vadd.f32 %v982_v32, %v981_v30  ;;  %v960_v36 = vpop.f32.mrb[14].mxu0  ;;  %v984_v37 = vpop.f32.mrb[14].mxu1 }
 0x183   : > { %v961_v38 = vpop.f32.mrb[15].mxu0  ;;  %v985_v39 = vpop.f32.mrb[15].mxu1 }
 0x184   : > { %v648_v40 = vadd.f32 %v959_v33, %v1722_v34  ;;  %v656_v41 = vadd.f32 %v983_v35, %v1722_v34  ;;  %v962_v42 = vadd.f32 %v961_v38, %v960_v36  ;;  %v986_v43 = vadd.f32 %v985_v39, %v984_v37 }
 0x186   : > { %v699_v44 = vmax.f32 %v648_v40, 0.0  ;;  %v707_v45 = vmax.f32 %v656_v41, 0.0  ;;  %v649_v46 = vadd.f32 %v962_v42, %v1722_v34  ;;  %v657_v47 = vadd.f32 %v986_v43, %v1722_v34 }
 0x188   : > { %715 = vst [vmem:[%s1730_s2 + $0x30] sm:$0xff] %v699_v44  ;;  %723 = vst [vmem:[%s1730_s2 + $0x70] sm:$0xff] %v707_v45  ;;  %v700_v48 = vmax.f32 %v649_v46, 0.0  ;;  %v708_v49 = vmax.f32 %v657_v47, 0.0 }
 0x18a   : > { %716 = vst [vmem:[%s1730_s2 + $0x38] sm:$0xff] %v700_v48  ;;  %724 = vst [vmem:[%s1730_s2 + $0x78] sm:$0xff] %v708_v49 }
 0x18b   : > { %1254 = shalt.err (!%p1251_p2)
}
 0x18c   : > { %s1255_s7 = scalar_lea.hbm %s1762_s10, 2048  ;;  %s1259_s22 = scalar_lea.hbm %s1895_s8, 8192 }
 0x18d   : > { %p1256_p5 = scmp.ne.s32.totalorder %s1762_s10, %s1255_s7  ;;  %p1260_p13 = scmp.lt.u32.totalorder %s1762_s10, %s1895_s8 }
 0x18e   : > { %p1261_p6 = scmp.lt.u32.totalorder %s1259_s22, %s1255_s7  ;;  %p1263_p12 = scmp.lt.u32.totalorder %s1255_s7, %s1762_s10 }
 0x18f   : > { %p1257_p3 = pnand %p1256_p5, %p1896_p9 }
 0x190   : > { %p1262_p1 = por %p1261_p6, %p1260_p13 }
 0x191   : > { %p1258_p7 = pneg %p1257_p3 }
 0x192   : > { %p1264_p0 = por %p1263_p12, %p1262_p1 }
 0x194   : > { %p1265_p4 = pnand %p1264_p0, %p1258_p7 }
 0x196   : > { %1268 = shalt.err (!%p1265_p4)
}
 0x197   : > { %s1400_s18 = smov 128   ;;  %s1401_s0 = smov 256  }
 0x198   : > { %s1402_s9 = smov 8  }
 0x199   : > { %1007 = dma.vmem_to_hbm [thread:$0]  (%p1896_p9), %s1764_s21, 2048, %s1762_s10, %s1772_s4, %s1400_s18, %s1401_s0, %s1402_s9  }
 0x19a PF: > { %p1021_p10 = scmp.ge.s32.totalorder %s1391_s25, 2  ;;  %s756_s11 = sand.u32 1, %s1339_s12  }
 0x19b   : > { %p1897_p8 = scmp.ne.s32.totalorder %s1886_s30, 0  ;;  %s757_s15 = scalar_lea.sflag [#allocation5], %s756_s11 }
 0x19d   : > { %p1017_p11 = pnand %p1021_p10, %p1897_p8 }
 0x19f   : > { %1334 = dma.done.wait (!%p1017_p11), %s757_s15, 2048  }
 0x1a0   : > { %1336 = vsyncadd (!%p1017_p11), %s757_s15, 4294965248  ;;  %s22_s25 = sadd.s32 1, %s1391_s25   ;;  %s1899_s21 = sld [smem:[#allocation16_spill]] }
 0x1a1   : > { %p1801_p2 = scmp.ge.s32.totalorder %s22_s25, 6   ;;  %s1900_s22 = sld [smem:[#allocation13_spill]] }
 0x1a2   : > { %s1901_s30 = sld [smem:[#allocation14_spill]]  ;;  %s1902_s27 = sld [smem:[#allocation15_spill]] }
 0x1a3   : > { %s1904_s12 = smov %s1343_s13  ;;  %s1905_s13 = smov %s1347_s14 }
 0x1a4   : > { %s1906_s14 = smov %s1616_s3  ;;  %s1907_s15 = smov %s1355_s16 }
 0x1a5   : > { %s1908_s16 = smov %s1359_s17  ;;  %s1910_s18 = smov %s1367_s19 }
 0x1a6   : > { %s1909_s17 = smov %s1899_s21  ;;  %s1911_s19 = smov %s1371_s20 }
 0x1a7   : > { %s1912_s20 = smov %s1613_s6  ;;  %s1913_s21 = smov %s1383_s23 }
 0x1a8   : > { %s1914_s23 = smov %s1901_s30  ;;  %s1915_s24 = smov %s1902_s27 }
 0x1a9   :  { %21 = sbr.rel (!%p1801_p2) target bundleno = 16 (0x10), region = 101 }
 0x1b0   :  { %762 = vsyncpa [#allocation4], 1 }
 0x1b1   :  { %764 = vsyncpa [#allocation4 + $0x1], 1 }
 0x1b2   :  { %765 = vsyncpa [#allocation7], 1 }
 0x1b3   :  { %767 = vsyncpa [#allocation7 + $0x1], 1 }
 0x1b4   :  { %768 = vsyncpa [#allocation5], 1 }
 0x1b5   :  { %770 = vsyncpa [#allocation5 + $0x1], 1 }

</bundles_post_ra>
